<compile_context>
chip_gen: v6e
topology: v6e:2x2x1
jax: 0.10.0
libtpu: 0.0.40
codegen_flags: <defaults>
</compile_context>

<pallas_src>
import jax
import jax.numpy as jnp
from jax.experimental import pallas as pl
from jax.experimental.pallas import tpu as pltpu

EPS = 1e-6

_MAX_ROW_TILE = 4096            # sanity cap; the VMEM budget is the real limiter
_MIN_GRID_DEPTH = 8             # when tiling, keep >=8 grid steps for pipelining
_FALLBACK_VMEM = 64 * 1024 * 1024   # v7x per-TC capacity (most conservative)


def _res_connect_kernel(x_ref, out_ref, a_ref, b_ref, o_ref):
    # Each grid step sees a (row_tile, hidden) block of x and out, and the
    # full (1, hidden) gain/bias vectors (broadcast over rows).
    o = out_ref[...].astype(jnp.float32)
    n = o.shape[-1]

    # Fused single pass: both cross-lane reductions are issued together so
    # the two XLU reduce chains overlap instead of serializing.
    s1 = jnp.sum(o, axis=-1, keepdims=True)
    s2 = jnp.sum(o * o, axis=-1, keepdims=True)
    mean = s1 * (1.0 / n)
    # torch.std defaults to the unbiased estimator (divide by N-1).
    var = jnp.maximum(s2 - n * (mean * mean), 0.0) * (1.0 / (n - 1))
    std = jnp.sqrt(var)
    denom = std + EPS

    # EUP approximate reciprocal + one Newton-Raphson refinement step:
    # relative error ~1e-7, keeps the divide off the VALU (free EUP slot).
    inv0 = pl.reciprocal(denom, approx=True)
    inv = inv0 * (2.0 - denom * inv0)

    normed = a_ref[...] * ((o - mean) * inv) + b_ref[...]
    # Residual add + cast in the native dtype: no full-tile f32 upcast of x.
    o_ref[...] = x_ref[...] + normed.astype(o_ref.dtype)


def _vmem_budget():
    """Per-generation (tile_budget_bytes, scoped_vmem_limit_bytes)."""
    try:
        cap = int(pltpu.get_tpu_info().vmem_capacity_bytes)
    except Exception:
        cap = 0
    if cap <= 0:
        cap = _FALLBACK_VMEM
    # ~55% of physical for the double-buffered I/O streams + f32 temporaries,
    # ~75% as the explicit compiler limit (v5e scoped default is only 16 MiB,
    # so always set this explicitly).
    return (cap * 11) // 20, (cap * 3) // 4


def _choose_row_tile(rows, hidden, in_itemsize, out_itemsize, budget):
    """Row tile + grid depth.

    Largest tile that fits the VMEM budget (including the kernel's f32
    intermediates), preferring an exact divisor of `rows` (every block full,
    no masked tail, no wrapper-side padding) and a grid at least
    _MIN_GRID_DEPTH deep when tiling so DMA/compute stay pipelined and v7x's
    two TensorCores each get several iterations.
    """
    sub = 16 if min(in_itemsize, out_itemsize) == 2 else 8   # sublane packing
    # Per-row VMEM bytes: double-buffered x/out/y streams plus ~4 f32
    # (row_tile, hidden) intermediates (upcast o, o*o, diff, normed).
    bytes_per_row = (2 * 2 * hidden * in_itemsize        # x, out (double-buffered)
                     + 2 * hidden * out_itemsize         # y      (double-buffered)
                     + 4 * hidden * 4)                    # f32 intermediates
    cap = max(sub, budget // bytes_per_row)
    cap = min(cap, _MAX_ROW_TILE)

    if rows <= cap:
        # Whole input in one block (block shape == full array dims: always legal).
        return rows, 1

    # Guarantee >= _MIN_GRID_DEPTH grid steps so there is always a next block
    # to prefetch and megacore sharding gets several iterations per core.
    depth_cap = -(-rows // _MIN_GRID_DEPTH)
    depth_cap = max(sub, ((depth_cap + sub - 1) // sub) * sub)
    cap = max(sub, min(cap, depth_cap))
    cap = (cap // sub) * sub

    # Prefer the largest divisor of rows (<= cap, multiple of sub): every
    # block is then full -> dense, unmasked stores.
    best = 0
    t = cap
    while t >= sub:
        if rows % t == 0:
            best = t
            break
        t -= sub
    if best >= max(sub, cap // 2):
        return best, rows // best

    # No good divisor: use the full cap and let Pallas mask the ragged final
    # block in-kernel (no extra HBM passes from wrapper-side padding).
    return cap, pl.cdiv(rows, cap)


def res_connect(x, out, a_2, b_2, *, row_tile=None):
    """x + layernorm(out) with layernorm params a_2 (gain), b_2 (bias).

    x, out: (..., hidden) float arrays of the same shape/dtype.
    a_2, b_2: (hidden,) float arrays.
    `hidden` should ideally be a multiple of 128 for lane-dense stores.
    """
    orig_shape = x.shape
    hidden = orig_shape[-1]
    rows = 1
    for d in orig_shape[:-1]:
        rows *= d

    budget, vmem_limit = _vmem_budget()
    in_itemsize = jnp.dtype(out.dtype).itemsize
    out_itemsize = jnp.dtype(x.dtype).itemsize
    if row_tile is None:
        row_tile, num_tiles = _choose_row_tile(
            rows, hidden, in_itemsize, out_itemsize, budget)
    else:
        num_tiles = pl.cdiv(rows, row_tile)

    x2 = x.reshape(rows, hidden)
    out2 = out.reshape(rows, hidden)
    a2 = a_2.reshape(1, hidden).astype(jnp.float32)
    b2 = b_2.reshape(1, hidden).astype(jnp.float32)

    result = pl.pallas_call(
        _res_connect_kernel,
        out_shape=jax.ShapeDtypeStruct((rows, hidden), x.dtype),
        grid_spec=pltpu.PrefetchScalarGridSpec(
            num_scalar_prefetch=0,
            grid=(num_tiles,),
            in_specs=[
                pl.BlockSpec((row_tile, hidden), lambda i: (i, 0)),
                pl.BlockSpec((row_tile, hidden), lambda i: (i, 0)),
                pl.BlockSpec((1, hidden), lambda i: (0, 0)),
                pl.BlockSpec((1, hidden), lambda i: (0, 0)),
            ],
            out_specs=pl.BlockSpec((row_tile, hidden), lambda i: (i, 0)),
        ),
        compiler_params=pltpu.CompilerParams(
            dimension_semantics=("parallel",),
            vmem_limit_bytes=vmem_limit,
        ),
    )(x2, out2, a2, b2)

    return result.reshape(orig_shape)


def res_connect_ref(x, out, a_2, b_2):
    """Pure-JAX reference mirroring the PyTorch forward (unbiased std, eps on std)."""
    o = out.astype(jnp.float32)
    mean = jnp.mean(o, axis=-1, keepdims=True)
    n = o.shape[-1]
    var = jnp.sum((o - mean) ** 2, axis=-1, keepdims=True) / (n - 1)
    std = jnp.sqrt(var)
    normed = a_2 * (o - mean) / (std + EPS) + b_2
    return (x.astype(jnp.float32) + normed).astype(x.dtype)


if __name__ == "__main__":
    key = jax.random.PRNGKey(0)
    kx, kout = jax.random.split(key)

    batch, seq, hidden = 2, 8, 32
    x = jax.random.normal(kx, (batch, seq, hidden), dtype=jnp.float32)
    out = jax.random.normal(kout, (batch, seq, hidden), dtype=jnp.float32)

    # Parameters per layernorm.__init__: a_2 = ones(features), b_2 = zeros(features).
    a_2 = jnp.ones((hidden,), dtype=jnp.float32)
    b_2 = jnp.zeros((hidden,), dtype=jnp.float32)

    y_ref = res_connect_ref(x, out, a_2, b_2)

    # Auto-tiled path (single full block for this small shape).
    y = jax.block_until_ready(res_connect(x, out, a_2, b_2))
    assert y.shape == x.shape
    # Tolerance accounts for the Newton-refined approximate reciprocal and the
    # fused sum/sum^2 variance.
    assert jnp.allclose(y, y_ref, atol=1e-4, rtol=1e-4), "mismatch vs reference"

    # Multi-tile path (forces the grid loop / per-block accumulation-free stream).
    y_tiled = jax.block_until_ready(res_connect(x, out, a_2, b_2, row_tile=8))
    assert jnp.allclose(y_tiled, y_ref, atol=1e-4, rtol=1e-4), "tiled mismatch"

    print("KERNEL_OK")
</pallas_src>

<mosaic_0001>
module attributes {stable_mosaic.version = 11 : i64} {
  func.func @_res_connect_kernel(%arg0: i32, %arg1: memref<16x32xf32, #tpu.memory_space<vmem>>, %arg2: memref<16x32xf32, #tpu.memory_space<vmem>>, %arg3: memref<1x32xf32, #tpu.memory_space<vmem>>, %arg4: memref<1x32xf32, #tpu.memory_space<vmem>>, %arg5: memref<16x32xf32, #tpu.memory_space<vmem>>) attributes {dimension_semantics = [#tpu.dimension_semantics<parallel>], iteration_bounds = array<i64: 1>, scalar_prefetch = 0 : i64, scratch_operands = 0 : i64, tpu.core_type = #tpu.core_type<tc>, window_params = [{transform_indices = @transform_0, window_bounds = array<i64: 16, 32>}, {transform_indices = @transform_1, window_bounds = array<i64: 16, 32>}, {pipeline_mode = #tpu.pipeline_mode<synchronous>, transform_indices = @transform_2, window_bounds = array<i64: 1, 32>}, {pipeline_mode = #tpu.pipeline_mode<synchronous>, transform_indices = @transform_3, window_bounds = array<i64: 1, 32>}, {transform_indices = @transform_4, window_bounds = array<i64: 16, 32>}]} {
    %c0 = arith.constant 0 : index
    %c0_0 = arith.constant 0 : index
    %0 = vector.load %arg2[%c0, %c0_0] : memref<16x32xf32, #tpu.memory_space<vmem>>, vector<16x32xf32>
    %cst = arith.constant dense<0.000000e+00> : vector<16xf32>
    %1 = vector.multi_reduction <add>, %0, %cst [1] : vector<16x32xf32> to vector<16xf32>
    %2 = vector.shape_cast %1 : vector<16xf32> to vector<16x1xf32>
    %3 = arith.mulf %0, %0 : vector<16x32xf32>
    %cst_1 = arith.constant dense<0.000000e+00> : vector<16xf32>
    %4 = vector.multi_reduction <add>, %3, %cst_1 [1] : vector<16x32xf32> to vector<16xf32>
    %5 = vector.shape_cast %4 : vector<16xf32> to vector<16x1xf32>
    %cst_2 = arith.constant 3.125000e-02 : f32
    %6 = vector.broadcast %cst_2 : f32 to vector<16x1xf32>
    %7 = arith.mulf %2, %6 : vector<16x1xf32>
    %8 = arith.mulf %7, %7 : vector<16x1xf32>
    %cst_3 = arith.constant 3.200000e+01 : f32
    %9 = vector.broadcast %cst_3 : f32 to vector<16x1xf32>
    %10 = arith.mulf %9, %8 : vector<16x1xf32>
    %11 = arith.subf %5, %10 : vector<16x1xf32>
    %cst_4 = arith.constant 0.000000e+00 : f32
    %12 = vector.broadcast %cst_4 : f32 to vector<16x1xf32>
    %13 = arith.maximumf %11, %12 : vector<16x1xf32>
    %cst_5 = arith.constant 0.0322580636 : f32
    %14 = vector.broadcast %cst_5 : f32 to vector<16x1xf32>
    %15 = arith.mulf %13, %14 : vector<16x1xf32>
    %16 = math.sqrt %15 : vector<16x1xf32>
    %cst_6 = arith.constant 9.99999997E-7 : f32
    %17 = vector.broadcast %cst_6 : f32 to vector<16x1xf32>
    %18 = arith.addf %16, %17 : vector<16x1xf32>
    %19 = tpu.reciprocal %18 {approx = true} : vector<16x1xf32> -> vector<16x1xf32>
    %20 = arith.mulf %18, %19 : vector<16x1xf32>
    %cst_7 = arith.constant 2.000000e+00 : f32
    %21 = vector.broadcast %cst_7 : f32 to vector<16x1xf32>
    %22 = arith.subf %21, %20 : vector<16x1xf32>
    %23 = arith.mulf %19, %22 : vector<16x1xf32>
    %c0_8 = arith.constant 0 : index
    %c0_9 = arith.constant 0 : index
    %24 = vector.load %arg3[%c0_8, %c0_9] : memref<1x32xf32, #tpu.memory_space<vmem>>, vector<1x32xf32>
    %25 = vector.broadcast %7 : vector<16x1xf32> to vector<16x32xf32>
    %26 = arith.subf %0, %25 : vector<16x32xf32>
    %27 = vector.broadcast %23 : vector<16x1xf32> to vector<16x32xf32>
    %28 = arith.mulf %26, %27 : vector<16x32xf32>
    %29 = vector.broadcast %24 : vector<1x32xf32> to vector<16x32xf32>
    %30 = arith.mulf %29, %28 : vector<16x32xf32>
    %c0_10 = arith.constant 0 : index
    %c0_11 = arith.constant 0 : index
    %31 = vector.load %arg4[%c0_10, %c0_11] : memref<1x32xf32, #tpu.memory_space<vmem>>, vector<1x32xf32>
    %32 = vector.broadcast %31 : vector<1x32xf32> to vector<16x32xf32>
    %33 = arith.addf %30, %32 : vector<16x32xf32>
    %c0_12 = arith.constant 0 : index
    %c0_13 = arith.constant 0 : index
    %34 = vector.load %arg1[%c0_12, %c0_13] : memref<16x32xf32, #tpu.memory_space<vmem>>, vector<16x32xf32>
    %35 = arith.addf %34, %33 : vector<16x32xf32>
    %c0_14 = arith.constant 0 : index
    %c0_15 = arith.constant 0 : index
    %36 = vector.load %arg5[%c0_14, %c0_15] : memref<16x32xf32, #tpu.memory_space<vmem>>, vector<16x32xf32>
    tpu.vector_store %arg5[%c0_14, %c0_15], %35 {strides = array<i32>} : memref<16x32xf32, #tpu.memory_space<vmem>>, vector<16x32xf32>,
    return
  }
  func.func @transform_0(%arg0: i32) -> (i32, i32) {
    %c0_i32 = arith.constant 0 : i32
    %c0_i32_0 = arith.constant 0 : i32
    return %arg0, %c0_i32 : i32, i32
  }
  func.func @transform_1(%arg0: i32) -> (i32, i32) {
    %c0_i32 = arith.constant 0 : i32
    %c0_i32_0 = arith.constant 0 : i32
    return %arg0, %c0_i32 : i32, i32
  }
  func.func @transform_2(%arg0: i32) -> (i32, i32) {
    %c0_i32 = arith.constant 0 : i32
    %c0_i32_0 = arith.constant 0 : i32
    %c0_i32_1 = arith.constant 0 : i32
    return %c0_i32, %c0_i32_0 : i32, i32
  }
  func.func @transform_3(%arg0: i32) -> (i32, i32) {
    %c0_i32 = arith.constant 0 : i32
    %c0_i32_0 = arith.constant 0 : i32
    %c0_i32_1 = arith.constant 0 : i32
    return %c0_i32, %c0_i32_0 : i32, i32
  }
  func.func @transform_4(%arg0: i32) -> (i32, i32) {
    %c0_i32 = arith.constant 0 : i32
    %c0_i32_0 = arith.constant 0 : i32
    return %arg0, %c0_i32 : i32, i32
  }
}

</mosaic_0001>

<bundles_post_ra>
// kernel: tpu_custom_call.1
= control target key start
LH: loop header
LB: loop body
LE: loop exit
PB: predicated region body
PF: predicated region fallthrough
CT: control target
= control target key end

     0   :  { %9 = vsyncpa [#allocation3], 0  ;;  %s292_s0 = inlined_call_operand.hbm [shape: f32[16,32], index: 0, kind: input, shape index: {}]   ;;  %s293_s1 = inlined_call_operand.hbm [shape: f32[16,32], index: 1, kind: input, shape index: {}]   ;;  %s294_s2 = inlined_call_operand.vmem [shape: f32[1,32], index: 2, kind: input, shape index: {}]   ;;  %s295_s3 = inlined_call_operand.vmem [shape: f32[1,32], index: 3, kind: input, shape index: {}]   ;;  %s296_s4 = inlined_call_operand.hbm [shape: f32[16,32], index: 4, kind: output, shape index: {}]  }
   0x1   :  { %10 = vsyncpa [#allocation6], 0 }
   0x2   :  { %11 = vsyncpa [#allocation4], 0  ;;  %s226_s15 = smov [#allocation2]  }
   0x3   :  { %s17_s16 = sshll.u32 %s226_s15, 4  ;;  %s18_s16 = int_to_ptr.vmem [resolvable:$true] %s17_s16 }
   0x4   :  { %s168_s17 = scalar_lea.vmem %s18_s16, 256  ;;  %p173_p1 = scmp.lt.s32.totalorder %s18_s16, %s18_s16 }
   0x5   :  { %p169_p0 = scmp.ne.s32.totalorder %s18_s16, %s168_s17  ;;  %p174_p2 = scmp.lt.s32.totalorder %s168_s17, %s168_s17 }
   0x7   :  { %p175_p3 = por %p174_p2, %p173_p1 }
   0x9   :  { %p176_p4 = pnand %p175_p3, %p169_p0 }
   0xb   :  { %179 = shalt.err (!%p176_p4)
}
   0xc   :  { %s227_s18 = smov 128   ;;  %s228_s19 = smov 8  }
   0xd   :  { %23 = dma.hbm_to_vmem [thread:$0]  %s292_s0, 256, %s18_s16, [#allocation3], %s227_s18, %s227_s18, %s228_s19  }
   0xe   :  { %s229_s22 = smov [#allocation5]  }
   0xf   :  { %s29_s23 = sshll.u32 %s229_s22, 4  ;;  %s30_s23 = int_to_ptr.vmem [resolvable:$true] %s29_s23 }
  0x10   :  { %s188_s24 = scalar_lea.vmem %s30_s23, 256  ;;  %p193_p6 = scmp.lt.s32.totalorder %s30_s23, %s30_s23 }
  0x11   :  { %p189_p5 = scmp.ne.s32.totalorder %s30_s23, %s188_s24  ;;  %p194_p7 = scmp.lt.s32.totalorder %s188_s24, %s188_s24 }
  0x13   :  { %p195_p8 = por %p194_p7, %p193_p6 }
  0x15   :  { %p196_p9 = pnand %p195_p8, %p189_p5 }
  0x17   :  { %199 = shalt.err (!%p196_p9)
}
  0x18   :  { %35 = dma.hbm_to_vmem [thread:$0]  %s293_s1, 256, %s30_s23, [#allocation6], %s227_s18, %s227_s18, %s228_s19  }
  0x19   :  { %220 = dma.done.wait [#allocation3], 256  }
  0x1a   :  { %221 = vsyncadd [#allocation3], 4294967040 }
  0x1b   :  { %222 = dma.done.wait [#allocation6], 256  }
  0x1c   :  { %223 = vsyncadd [#allocation6], 4294967040  ;;  %vm48_vm0 = vcmask 261120   ;;  %v46_v0 = vld [vmem:[#allocation5] sm:$0xff]  ;;  %v268_v1 = vld [vmem:[#allocation5 + $0x8] sm:$0xff]  ;;  %s230_s29 = smov [#allocation7]  }
  0x1d   :  { %v49_v2 = vsel %vm48_vm0, %v46_v0, 0.0  ;;  %v55_v3 = vmul.f32 %v46_v0, %v46_v0  ;;  %v56_v4 = vmul.f32 %v268_v1, %v268_v1  ;;  %v52_v5 = vsel %vm48_vm0, %v268_v1, 0.0  ;;  %v145_v43 = vld [vmem:[%s294_s2] ss:$0 sm:$0xff]  ;;  %v122_v55 = vld [vmem:[#allocation2 + $0x8] sm:$0xff]  ;;  %s132_s2 = sshll.u32 %s230_s29, 4  ;;  %s133_s2 = int_to_ptr.vmem [resolvable:$true] %s132_s2 }
  0x1e   :  { %50 = vadd.xlane.f32.xlu0 %v49_v2  ;;  %v146_v46 = vld [vmem:[%s295_s3] ss:$0 sm:$0xff]  ;;  %s200_s3 = scalar_lea.vmem %s133_s2, 256  ;;  %p205_p11 = scmp.lt.s32.totalorder %s133_s2, %s133_s2 }
  0x1f   :  { %v57_v6 = vsel %vm48_vm0, %v55_v3, 0.0  ;;  %v60_v7 = vsel %vm48_vm0, %v56_v4, 0.0  ;;  %v121_v50 = vld [vmem:[#allocation2] sm:$0xff]  ;;  %p201_p10 = scmp.ne.s32.totalorder %s133_s2, %s200_s3  ;;  %p206_p12 = scmp.lt.s32.totalorder %s200_s3, %s200_s3 }
  0x20   :  { %58 = vadd.xlane.f32.xlu1 %v57_v6 }
  0x21   :  { %p207_p13 = por %p206_p12, %p205_p11 }
  0x22   :  { %53 = vadd.xlane.f32.xlu0 %v52_v5 }
  0x23   :  { %p208_p0 = pnand %p207_p13, %p201_p10 }
  0x24   :  { %61 = vadd.xlane.f32.xlu1 %v60_v7 }
  0xa7   :  { %v51_v8 = vpop.xlane.xlu0 %50 }
  0xa8   :  { %v63_v9 = vmul.f32 0.03125, %v51_v8 }
  0xa9   :  { %v59_v10 = vpop.xlane.xlu1 %58 }
  0xaa   :  { %v65_v11 = vmul.f32 %v63_v9, %v63_v9  ;;  %v100_v40 = vsub.f32 %v46_v0, %v63_v9 }
  0xab   :  { %v54_v12 = vpop.xlane.xlu0 %53 }
  0xac   :  { %v64_v13 = vmul.f32 0.03125, %v54_v12  ;;  %v67_v14 = vmul.f32 32.0, %v65_v11 }
  0xad   :  { %v62_v17 = vpop.xlane.xlu1 %61 }
  0xae   :  { %v66_v15 = vmul.f32 %v64_v13, %v64_v13  ;;  %v69_v16 = vsub.f32 %v59_v10, %v67_v14  ;;  %v101_v48 = vsub.f32 %v268_v1, %v64_v13 }
  0xb0   :  { %v68_v18 = vmul.f32 32.0, %v66_v15  ;;  %v71_v19 = vmax.f32 %v69_v16, 0.0 }
  0xb2   :  { %v73_v20 = vmul.f32 0.032258064, %v71_v19  ;;  %v70_v21 = vsub.f32 %v62_v17, %v68_v18 }
  0xb4   :  { %152 = vrsqrt.f32 %v73_v20  ;;  %v72_v22 = vmax.f32 %v70_v21, 0.0  ;;  %vm77_vm1 = vcmp.eq.f32.partialorder %v73_v20, inf  ;;  %v80_v26 = vand.u32 2147483648, %v73_v20 }
  0xb5   :  { %vm79_vm2 = vcmp.eq.f32.partialorder %v73_v20, 0.0 }
  0xb6   :  { %v74_v23 = vmul.f32 0.032258064, %v72_v22 }
  0xb8   :  { %154 = vrsqrt.f32 %v74_v23  ;;  %vm84_vm3 = vcmp.eq.f32.partialorder %v74_v23, inf  ;;  %v87_v32 = vand.u32 2147483648, %v74_v23  ;;  %vm86_vm4 = vcmp.eq.f32.partialorder %v74_v23, 0.0 }
  0xc1   :  { %v153_v24 = vpop.eup %152 }
  0xc2   :  { %v76_v25 = vmul.f32 %v153_v24, %v73_v20 }
  0xc4   :  { %v78_v27 = vsel %vm77_vm1, %v73_v20, %v76_v25 }
  0xc5   :  { %v81_v28 = vsel %vm79_vm2, %v80_v26, %v78_v27  ;;  %v155_v29 = vpop.eup %154 }
  0xc6   :  { %v89_v30 = vadd.f32 1e-06, %v81_v28  ;;  %v83_v31 = vmul.f32 %v155_v29, %v74_v23 }
  0xc8   :  { %156 = vrcp.f32 %v89_v30  ;;  %v85_v33 = vsel %vm84_vm3, %v74_v23, %v83_v31 }
  0xc9   :  { %v88_v34 = vsel %vm86_vm4, %v87_v32, %v85_v33 }
  0xca   :  { %v90_v35 = vadd.f32 1e-06, %v88_v34 }
  0xcc   :  { %158 = vrcp.f32 %v90_v35 }
  0xd5   :  { %v157_v36 = vpop.eup %156 }
  0xd6   :  { %v93_v37 = vmul.f32 %v157_v36, %v89_v30 }
  0xd8   :  { %v95_v38 = vsub.f32 2.0, %v93_v37 }
  0xd9   :  { %v159_v39 = vpop.eup %158 }
  0xda   :  { %v97_v41 = vmul.f32 %v157_v36, %v95_v38  ;;  %v94_v42 = vmul.f32 %v159_v39, %v90_v35 }
  0xdc   :  { %v102_v44 = vmul.f32 %v100_v40, %v97_v41  ;;  %v96_v45 = vsub.f32 2.0, %v94_v42 }
  0xde   :  { %v110_v47 = vmul.f32 %v145_v43, %v102_v44  ;;  %v98_v49 = vmul.f32 %v159_v39, %v96_v45 }
  0xe0   :  { %v119_v51 = vadd.f32 %v146_v46, %v110_v47  ;;  %v103_v52 = vmul.f32 %v101_v48, %v98_v49 }
  0xe2   :  { %v123_v53 = vadd.f32 %v121_v50, %v119_v51  ;;  %v111_v54 = vmul.f32 %v145_v43, %v103_v52 }
  0xe4   :  { %125 = vst.msk [vmem:[#allocation7] sm:$0xff] %vm48_vm0, %v123_v53  ;;  %v120_v56 = vadd.f32 %v146_v46, %v111_v54 }
  0xe6   :  { %v124_v57 = vadd.f32 %v122_v55, %v120_v56 }
  0xe8   :  { %126 = vst.msk [vmem:[#allocation7 + $0x8] sm:$0xff] %vm48_vm0, %v124_v57 }
  0xe9   :  { %211 = shalt.err (!%p208_p0)
}
  0xea   :  { %138 = dma.vmem_to_hbm [thread:$0]  %s133_s2, 256, %s296_s4, [#allocation4], %s227_s18, %s227_s18, %s228_s19  }
  0xeb   :  { %224 = dma.done.wait [#allocation4], 256  }
  0xec   :  { %225 = vsyncadd [#allocation4], 4294967040 }
  0xed   :  { %142 = vsyncpa [#allocation3], 1 }
  0xee   :  { %143 = vsyncpa [#allocation6], 1 }
  0xef   :  { %144 = vsyncpa [#allocation4], 1 }

</bundles_post_ra>
